<compile_context>
chip_gen: v6e
topology: v6e:2x2x1
jax: 0.10.0
libtpu: 0.0.40
codegen_flags: <defaults>
</compile_context>

<pallas_src>
import functools

import jax
import jax.numpy as jnp
from jax import lax
from jax.experimental import pallas as pl
from jax.experimental.pallas import tpu as pltpu


def _layernorm_kernel(x_ref, g_ref, b_ref, o_ref, *, eps, inv_n):
    # x_ref: (1, C, HW) block for one batch sample, lane-dense on HW.
    x = x_ref[...].astype(jnp.float32)

    # Single sweep: sum and sum-of-squares (x*x is VALU filler under the
    # memory-bound regime).  var = E[x^2] - mean^2 with f32 accumulation;
    # clamp to 0 to guard tiny negative values from cancellation.
    s1 = jnp.sum(x)
    s2 = jnp.sum(x * x)
    mean = s1 * inv_n
    var = jnp.maximum(s2 * inv_n - mean * mean, 0.0)
    inv_std = lax.rsqrt(var + eps)  # EUP slot; keep in-kernel.

    # Affine params: (1, C, 1) slab, lane-splat broadcast over HW.
    g = g_ref[...].astype(jnp.float32)
    b = b_ref[...].astype(jnp.float32)

    y = (x - mean) * inv_std
    o_ref[...] = (y * g + b).astype(o_ref.dtype)


def layer_norm(x, gamma, beta, eps=1e-5):
    """Pallas TPU LayerNorm matching the reference PyTorch module.

    x:     (N, C, H, W)
    gamma: (1, C, 1, 1)
    beta:  (1, C, 1, 1)
    """
    n, c, h, w = x.shape
    assert gamma.shape == (1, c, 1, 1) and beta.shape == (1, c, 1, 1)
    hw = h * w

    # Lane-dense layout: fold H, W onto the trailing (128-lane) axis.
    x3 = x.reshape(n, c, hw)
    g3 = gamma.reshape(1, c, 1)
    b3 = beta.reshape(1, c, 1)

    # eps / 1/n as Python floats -> compile-time constants (fixes the
    # "kernel captures constants" error from passing a jnp scalar).
    kernel = functools.partial(
        _layernorm_kernel, eps=float(eps), inv_n=1.0 / float(c * hw)
    )

    # VMEM budget: double-buffered input + output block, f32 temporaries,
    # params.  Clamp to [32 MiB, 64 MiB] (safe on v5e/v6e; v7x scoped default).
    elt = jnp.dtype(x.dtype).itemsize
    block_bytes = c * hw * elt
    est = 4 * block_bytes + 4 * c * hw * 4 + 2 * c * 4
    vmem_limit = int(min(max(2 * est, 32 * 1024 * 1024), 64 * 1024 * 1024))
    # TODO(synk): if C*H*W grows past the VMEM budget (notably v7x's 64 MiB
    # physical VMEM), tile the flattened HW axis as a trailing "arbitrary"
    # reduction grid axis with sum/sumsq scratch accumulators (two-pass
    # stats-then-normalize) instead of one whole-sample block per step.

    out3 = pl.pallas_call(
        kernel,
        out_shape=jax.ShapeDtypeStruct((n, c, hw), x.dtype),
        grid_spec=pltpu.PrefetchScalarGridSpec(
            num_scalar_prefetch=0,
            grid=(n,),
            in_specs=[
                pl.BlockSpec((1, c, hw), lambda i: (i, 0, 0)),
                pl.BlockSpec((1, c, 1), lambda i: (0, 0, 0)),
                pl.BlockSpec((1, c, 1), lambda i: (0, 0, 0)),
            ],
            out_specs=pl.BlockSpec((1, c, hw), lambda i: (i, 0, 0)),
        ),
        compiler_params=pltpu.CompilerParams(
            dimension_semantics=("parallel",),
            vmem_limit_bytes=vmem_limit,
        ),
    )(x3, g3, b3)

    return out3.reshape(n, c, h, w)


def layer_norm_ref(x, gamma, beta, eps=1e-5):
    xf = x.astype(jnp.float32)
    mean = jnp.mean(xf, axis=(1, 2, 3), keepdims=True)
    var = jnp.mean((xf - mean) ** 2, axis=(1, 2, 3), keepdims=True)
    y = (xf - mean) / jnp.sqrt(var + eps)
    return (y * gamma + beta).astype(x.dtype)


if __name__ == "__main__":
    key = jax.random.PRNGKey(0)
    N, C, H, W = 2, 4, 16, 16

    x = jax.random.normal(key, (N, C, H, W), dtype=jnp.float32)
    # Deterministic parameter init matching nn.init.ones_(gamma), zeros_(beta).
    gamma = jnp.ones((1, C, 1, 1), dtype=jnp.float32)
    beta = jnp.zeros((1, C, 1, 1), dtype=jnp.float32)

    out = jax.block_until_ready(layer_norm(x, gamma, beta, eps=1e-5))

    ref = layer_norm_ref(x, gamma, beta, eps=1e-5)
    assert out.shape == (N, C, H, W)
    assert jnp.allclose(out, ref, atol=1e-5, rtol=1e-5)

    print("KERNEL_OK")
</pallas_src>

<mosaic_0001>
module attributes {stable_mosaic.version = 11 : i64} {
  func.func @_layernorm_kernel(%arg0: i32, %arg1: memref<1x4x256xf32, #tpu.memory_space<vmem>>, %arg2: memref<1x4x1xf32, #tpu.memory_space<vmem>>, %arg3: memref<1x4x1xf32, #tpu.memory_space<vmem>>, %arg4: memref<1x4x256xf32, #tpu.memory_space<vmem>>) attributes {dimension_semantics = [#tpu.dimension_semantics<parallel>], iteration_bounds = array<i64: 2>, scalar_prefetch = 0 : i64, scratch_operands = 0 : i64, tpu.core_type = #tpu.core_type<tc>, window_params = [{transform_indices = @transform_0, window_bounds = array<i64: 1, 4, 256>}, {pipeline_mode = #tpu.pipeline_mode<synchronous>, transform_indices = @transform_1, window_bounds = array<i64: 1, 4, 1>}, {pipeline_mode = #tpu.pipeline_mode<synchronous>, transform_indices = @transform_2, window_bounds = array<i64: 1, 4, 1>}, {transform_indices = @transform_3, window_bounds = array<i64: 1, 4, 256>}]} {
    %c0 = arith.constant 0 : index
    %c0_0 = arith.constant 0 : index
    %c0_1 = arith.constant 0 : index
    %0 = vector.load %arg1[%c0, %c0_0, %c0_1] : memref<1x4x256xf32, #tpu.memory_space<vmem>>, vector<1x4x256xf32>
    %1 = vector.shape_cast %0 : vector<1x4x256xf32> to vector<1x1x4x256xf32>
    %cst = arith.constant dense<0.000000e+00> : vector<1xf32>
    %2 = vector.multi_reduction <add>, %1, %cst [1, 2, 3] : vector<1x1x4x256xf32> to vector<1xf32>
    %3 = vector.shape_cast %2 : vector<1xf32> to vector<1x1x1x1xf32>
    %4 = vector.extract %3[0, 0, 0, 0] : f32 from vector<1x1x1x1xf32>
    %5 = arith.mulf %0, %0 : vector<1x4x256xf32>
    %6 = vector.shape_cast %5 : vector<1x4x256xf32> to vector<1x1x4x256xf32>
    %cst_2 = arith.constant dense<0.000000e+00> : vector<1xf32>
    %7 = vector.multi_reduction <add>, %6, %cst_2 [1, 2, 3] : vector<1x1x4x256xf32> to vector<1xf32>
    %8 = vector.shape_cast %7 : vector<1xf32> to vector<1x1x1x1xf32>
    %9 = vector.extract %8[0, 0, 0, 0] : f32 from vector<1x1x1x1xf32>
    %cst_3 = arith.constant 9.765625E-4 : f32
    %10 = arith.mulf %4, %cst_3 : f32
    %cst_4 = arith.constant 9.765625E-4 : f32
    %11 = arith.mulf %9, %cst_4 : f32
    %12 = arith.mulf %10, %10 : f32
    %13 = arith.subf %11, %12 : f32
    %cst_5 = arith.constant 0.000000e+00 : f32
    %14 = arith.maximumf %13, %cst_5 : f32
    %cst_6 = arith.constant 9.99999974E-6 : f32
    %15 = arith.addf %14, %cst_6 : f32
    %16 = math.rsqrt %15 : f32
    %c0_7 = arith.constant 0 : index
    %c0_8 = arith.constant 0 : index
    %c0_9 = arith.constant 0 : index
    %17 = vector.load %arg2[%c0_7, %c0_8, %c0_9] : memref<1x4x1xf32, #tpu.memory_space<vmem>>, vector<1x4x1xf32>
    %c0_10 = arith.constant 0 : index
    %c0_11 = arith.constant 0 : index
    %c0_12 = arith.constant 0 : index
    %18 = vector.load %arg3[%c0_10, %c0_11, %c0_12] : memref<1x4x1xf32, #tpu.memory_space<vmem>>, vector<1x4x1xf32>
    %19 = vector.broadcast %10 : f32 to vector<1x4x256xf32>
    %20 = arith.subf %0, %19 : vector<1x4x256xf32>
    %21 = vector.broadcast %16 : f32 to vector<1x4x256xf32>
    %22 = arith.mulf %20, %21 : vector<1x4x256xf32>
    %23 = vector.broadcast %17 : vector<1x4x1xf32> to vector<1x4x256xf32>
    %24 = arith.mulf %22, %23 : vector<1x4x256xf32>
    %25 = vector.broadcast %18 : vector<1x4x1xf32> to vector<1x4x256xf32>
    %26 = arith.addf %24, %25 : vector<1x4x256xf32>
    %c0_13 = arith.constant 0 : index
    %c0_14 = arith.constant 0 : index
    %c0_15 = arith.constant 0 : index
    %27 = vector.load %arg4[%c0_13, %c0_14, %c0_15] : memref<1x4x256xf32, #tpu.memory_space<vmem>>, vector<1x4x256xf32>
    tpu.vector_store %arg4[%c0_13, %c0_14, %c0_15], %26 {strides = array<i32>} : memref<1x4x256xf32, #tpu.memory_space<vmem>>, vector<1x4x256xf32>,
    return
  }
  func.func @transform_0(%arg0: i32) -> (i32, i32, i32) {
    %c0_i32 = arith.constant 0 : i32
    %c0_i32_0 = arith.constant 0 : i32
    %c0_i32_1 = arith.constant 0 : i32
    return %arg0, %c0_i32, %c0_i32_0 : i32, i32, i32
  }
  func.func @transform_1(%arg0: i32) -> (i32, i32, i32) {
    %c0_i32 = arith.constant 0 : i32
    %c0_i32_0 = arith.constant 0 : i32
    %c0_i32_1 = arith.constant 0 : i32
    %c0_i32_2 = arith.constant 0 : i32
    return %c0_i32, %c0_i32_0, %c0_i32_1 : i32, i32, i32
  }
  func.func @transform_2(%arg0: i32) -> (i32, i32, i32) {
    %c0_i32 = arith.constant 0 : i32
    %c0_i32_0 = arith.constant 0 : i32
    %c0_i32_1 = arith.constant 0 : i32
    %c0_i32_2 = arith.constant 0 : i32
    return %c0_i32, %c0_i32_0, %c0_i32_1 : i32, i32, i32
  }
  func.func @transform_3(%arg0: i32) -> (i32, i32, i32) {
    %c0_i32 = arith.constant 0 : i32
    %c0_i32_0 = arith.constant 0 : i32
    %c0_i32_1 = arith.constant 0 : i32
    return %arg0, %c0_i32, %c0_i32_0 : i32, i32, i32
  }
}

</mosaic_0001>

<bundles_post_ra>
// kernel: tpu_custom_call.1
= control target key start
LH: loop header
LB: loop body
LE: loop exit
PB: predicated region body
PF: predicated region fallthrough
CT: control target
= control target key end

     0   :  { %8 = vsyncpa [#allocation3], 0  ;;  %s693_s0 = inlined_call_operand.hbm [shape: f32[2,4,256], index: 0, kind: input, shape index: {}]   ;;  %s694_s1 = inlined_call_operand.vmem [shape: f32[1,4,1], index: 1, kind: input, shape index: {}]   ;;  %s695_s2 = inlined_call_operand.vmem [shape: f32[1,4,1], index: 2, kind: input, shape index: {}]   ;;  %s696_s3 = inlined_call_operand.hbm [shape: f32[2,4,256], index: 3, kind: output, shape index: {}]  }
   0x1   :  { %10 = vsyncpa [#allocation3 + $0x1], 0 }
   0x2   :  { %11 = vsyncpa [#allocation4], 0 }
   0x3   :  { %13 = vsyncpa [#allocation4 + $0x1], 0  ;;  %s542_s12 = smov 0   ;;  %s544_s13 = smov 0  }
   0x4   :  { %s546_s14 = smov 0   ;;  %s548_s15 = smov 0  }
   0x5 LB: > { %s563_s16 = sadd.s32 4294967295, %s515_s15   ;;  %s347_s17 = sadd.s32 4294967294, %s515_s15   ;;  %s515_s15 = sphi %s548_s15, %s713_s15   ;;  %s511_s14 = sphi %s546_s14, %s712_s14   ;;  %s507_s13 = sphi %s544_s13, %s711_s13   ;;  %s503_s12 = sphi %s542_s12, %s710_s12  }
   0x6   : > { %s567_s18 = sadd.s32 1, %s515_s15   ;;  %s26_s19 = sadd.s32 1, %s511_s14 }
   0x7   : > { %s23_s20 = ssub.s32 %s515_s15, %s567_s18  ;;  %p33_p0 = scmp.ne.s32.totalorder %s511_s14, %s507_s13 }
   0x8   : > { %p24_p1 = scmp.eq.s32.totalorder %s23_s20, 0  ;;  %p34_p2 = scmp.eq.s32.totalorder %s515_s15, 0 }
   0x9   : > { %p39_p3 = scmp.ne.s32.totalorder %s507_s13, %s503_s12  ;;  %p40_p4 = scmp.eq.s32.totalorder %s563_s16, 0 }
   0xa   : > { %s579_s21 = scalar_select %p24_p1, %s511_s14, %s26_s19  }
   0xb   : > { %p581_p5 = por %p34_p2, %p33_p0  ;;  %p585_p6 = por %p40_p4, %p39_p3 }
   0xc   : > { %p105_p7 = scmp.eq.s32.totalorder %s563_s16, 1  ;;  %p111_p8 = scmp.eq.s32.totalorder %s347_s17, 1 }
   0xd   : > { %s700_s23 = scalar_select %p585_p6, 1, 0 }
   0xe   : > { %p381_p10 = scmp.lt.s32.totalorder %s515_s15, 2  ;;  %p592_p11 = por %p105_p7, %p33_p0 }
   0xf   : > { %p596_p12 = por %p111_p8, %p39_p3  ;;  %s137_s26 = sand.u32 1, %s511_s14  }
  0x10   : > { %s701_s24 = scalar_select %p592_p11, 1, 0 }
  0x11   : > { %s702_s25 = scalar_select %p596_p12, 1, 0 }
  0x12   : > { %s361_s27 = sshll.u32 %s515_s15, 7  ;;  %s350_s28 = sshll.u32 %s137_s26, 3 }
  0x13   : > { %s605_s4 = scalar_lea.hbm %s693_s0, %s361_s27  ;;  %s141_s5 = scalar_lea.vmem [#allocation2], %s350_s28 }
  0x14   : > { %s149_s6 = sshll.u32 %s141_s5, 4  ;;  %p609_p13 = pnand %p381_p10, %p581_p5  ;;  %s613_s6 = int_to_ptr.vmem [resolvable:$true] %s149_s6 }
  0x15   : > { %s138_s8 = scalar_lea.sflag [#allocation3], %s137_s26  ;;  %s423_s9 = scalar_lea.hbm %s605_s4, 128 }
  0x16   : > { %p424_p2 = scmp.ne.s32.totalorder %s605_s4, %s423_s9  ;;  %p425_p3 = pneg %p609_p13 }
  0x17   : > { %s428_s17 = scalar_lea.hbm %s693_s0, 256  ;;  %p429_p5 = scmp.lt.s32.totalorder %s605_s4, %s693_s0 }
  0x18   : > { %p426_p4 = pnand %p425_p3, %p424_p2  ;;  %p430_p8 = scmp.lt.s32.totalorder %s428_s17, %s423_s9 }
  0x1a   : > { %p427_p7 = pneg %p426_p4  ;;  %p431_p10 = por %p430_p8, %p429_p5 }
  0x1c   : > { %p432_p9 = pnand %p431_p10, %p427_p7 }
  0x1e   : > { %435 = shalt.err (!%p432_p9)
}
  0x1f   : > { %s436_s22 = scalar_lea.vmem %s613_s6, 128  ;;  %s517_s26 = smov [#allocation2]  }
  0x20   : > { %p437_p0 = scmp.ne.s32.totalorder %s613_s6, %s436_s22  ;;  %s441_s27 = sshll.u32 %s517_s26, 4  ;;  %s442_s27 = int_to_ptr.vmem [resolvable:$false] %s441_s27 }
  0x21   : > { %s443_s28 = scalar_lea.vmem %s442_s27, 256  ;;  %p444_p4 = scmp.lt.s32.totalorder %s613_s6, %s442_s27 }
  0x22   : > { %p439_p1 = pnand %p437_p0, %p425_p3  ;;  %p445_p12 = scmp.lt.s32.totalorder %s443_s28, %s436_s22 }
  0x24   : > { %p440_p2 = pneg %p439_p1  ;;  %p446_p11 = por %p445_p12, %p444_p4 }
  0x26   : > { %p447_p6 = pnand %p446_p11, %p440_p2 }
  0x28   : > { %450 = shalt.err (!%p447_p6)
}
  0x29   : > { %376 = dma.hbm_to_vmem [thread:$0]  (!%p609_p13), %s605_s4, 128, %s613_s6, %s138_s8  }
  0x2a   : > { %p704_p9 = scmp.lt.s32.totalorder %s515_s15, 3  ;;  %p705_p7 = scmp.ge.s32.totalorder %s515_s15, 1 }
  0x2c   : > { %p155_p0 = pnand %p705_p7, %p704_p9 }
  0x2d   : > { %s640_s29 = sand.u32 (!%p155_p0), 1, %s507_s13   ;;  %p706_p6 = scmp.ne.s32.totalorder (!%p155_p0), %s700_s23, 0 }
  0x2e   : > { %158 = sbr.rel (%p155_p0) target bundleno = 354 (0x162), region = 32  ;;  %s354_s30 = sshll.u32 (!%p155_p0), %s640_s29, 3 }
  0x2f   : > { %s161_s5 = scalar_lea.sflag (!%p155_p0), [#allocation3], %s640_s29  ;;  %s164_s7 = scalar_lea.vmem (!%p155_p0), [#allocation2], %s354_s30 }
  0x33   : > { %494 = dma.done.wait (%p706_p6), %s161_s5, 128  }
  0x34   : > { %496 = vsyncadd (%p706_p6), %s161_s5, 4294967168  ;;  %vm191_vm0 = vcmask 1043456   ;;  %v187_v0 = vld [vmem:[%s164_s7] sm:$0xff]  ;;  %v518_v10 = vmov 0   ;;  %s519_s22 = smov 0.0   ;;  %v242_v31 = vlaneseq  ;;  %s362_s5 = sshll.u32 %s563_s16, 7 }
  0x35   : > { %v189_v1 = vcombine.high %v187_v0, %v187_v0  ;;  %v192_v2 = vsel %vm191_vm0, %v187_v0, 0.0  ;;  %v204_v3 = vmul.f32 %v187_v0, %v187_v0  ;;  %418 = vset.pattern.permute.xlu1 %v518_v10  ;;  %v229_v11 = vld [vmem:[%s694_s1] sm:$0xf]  ;;  %419 = vset.pattern.permute.xlu0 %v518_v10  ;;  %v520_v29 = vmov 839922192   ;;  %s186_s7 = scalar_lea.vmem [#allocation5], %s354_s30  ;;  %s275_s8 = scalar_lea.hbm %s696_s3, %s362_s5 }
  0x36   : > { %237 = vperm.xlu1 %418, %v229_v11   ;;  %v230_v12 = vld [vmem:[%s695_s2] sm:$0xf]  ;;  %v240_v30 = vunpack.c.l.s4 %v520_v29  ;;  %v243_v33 = vshrl.u32 %v242_v31, 7  ;;  %s277_s4 = sshll.u32 %s186_s7, 4  ;;  %p707_p12 = scmp.ne.s32.totalorder %s701_s24, 0  ;;  %s278_s4 = int_to_ptr.vmem [resolvable:$true] %s277_s4 }
  0x37   : > { %v193_v4 = vsel %vm191_vm0, %v189_v1, 0.0  ;;  %v206_v5 = vcombine.high %v204_v3, %v204_v3  ;;  %v208_v6 = vsel %vm191_vm0, %v204_v3, 0.0 }
  0x38   : > { %v194_v7 = vadd.f32 %v193_v4, %v192_v2  ;;  %v241_v32 = vunpack.c.0.s8 %v240_v30 }
  0x39   : > { %v209_v8 = vsel %vm191_vm0, %v206_v5, 0.0 }
  0x3a   : > { %195 = vadd.xlane.f32.xlu0 %v194_v7  ;;  %v210_v9 = vadd.f32 %v209_v8, %v208_v6  ;;  %250 = vperm.xlu1 %418, %v230_v12   ;;  %v244_v36 = vsub.s32 %v241_v32, %v243_v33 }
  0x3e   : > { %211 = vadd.xlane.f32.xlu0 %v210_v9 }
  0xb1   : > { %v238_v34 = vpop.permute.xlu1 %237 }
  0xb2   : > { %v245_v40 = vrot.slane %v238_v34, %v244_v36 }
  0xb5   : > { %v251_v38 = vpop.permute.xlu1 %250 }
  0xb6   : > { %v258_v42 = vrot.slane %v251_v38, %v244_v36 }
  0xc3   : > { %v196_v13 = vpop.xlane.xlu0 %195 }
  0xc4   : > { %v197_v14 = vrot.slane %v196_v13, 4 }
  0xc6   : > { %v198_v15 = vadd.f32 %v197_v14, %v196_v13 }
  0xc7   : > { %v212_v16 = vpop.xlane.xlu0 %211 }
  0xc8   : > { %v199_v17 = vrot.slane %v198_v15, 2  ;;  %v213_v18 = vrot.slane %v212_v16, 4 }
  0xca   : > { %v214_v19 = vadd.f32 %v213_v18, %v212_v16  ;;  %v200_v20 = vadd.f32 %v199_v17, %v198_v15 }
  0xcc   : > { %v215_v21 = vrot.slane %v214_v19, 2  ;;  %v201_v22 = vrot.slane %v200_v20, 1 }
  0xce   : > { %v216_v23 = vadd.f32 %v215_v21, %v214_v19  ;;  %v202_v24 = vadd.f32 %v201_v22, %v200_v20 }
  0xd0   : > { %363 = vpush %v202_v24  ;;  %v217_v25 = vrot.slane %v216_v23, 1 }
  0xd2   : > { %v218_v26 = vadd.f32 %v217_v25, %v216_v23 }
  0xd4   : > { %365 = vpush %v218_v26 }
 0x101   : > { %s364_s9 = spop %363 }
 0x102   : > { %s220_s10 = smul.f32 0.0009765625, %s364_s9  ;;  %s263_s9 = scalar_lea.sflag [#allocation4], %s640_s29 }
 0x104   : > { %s222_s11 = smul.f32 %s220_s10, %s220_s10  ;;  %v231_v35 = vstv %s220_s10  ;;  %s451_s10 = scalar_lea.vmem %s278_s4, 128 }
 0x105   : > { %s366_s17 = spop %365  ;;  %v232_v37 = vsub.f32 %v187_v0, %v231_v35  ;;  %p452_p11 = scmp.ne.s32.totalorder %s278_s4, %s451_s10 }
 0x106   : > { %s221_s19 = smul.f32 0.0009765625, %s366_s17 }
 0x107   : > { %p453_p13 = pnand %p452_p11, %p707_p12 }
 0x108   : > { %s223_s20 = ssub.f32 %s221_s19, %s222_s11  ;;  %s521_s11 = smov [#allocation5]  }
 0x109   : > { %p454_p1 = pneg %p453_p13  ;;  %s455_s16 = sshll.u32 %s521_s11, 4  ;;  %s456_s16 = int_to_ptr.vmem [resolvable:$false] %s455_s16 }
 0x10a   : > { %s224_s26 = smax.f32 %s519_s22, %s223_s20  ;;  %s457_s30 = scalar_lea.vmem %s456_s16, 256 }
 0x10b   : > { %s225_s27 = sadd.f32 1e-05, %s224_s26  ;;  %p458_p3 = scmp.lt.s32.totalorder %s278_s4, %s456_s16 }
 0x10c   : > { %p459_p5 = scmp.lt.s32.totalorder %s457_s30, %s451_s10 }
 0x10d   : > { %v226_v27 = vstv %s225_s27 }
 0x10e   : > { %421 = vrsqrt.f32 %v226_v27  ;;  %p460_p8 = por %p459_p5, %p458_p3 }
 0x110   : > { %p461_p10 = pnand %p460_p8, %p454_p1 }
 0x11b   : > { %v422_v28 = vpop.eup %421 }
 0x11c   : > { %367 = vpush %v422_v28 }
 0x14d   : > { %s368_s28 = spop %367 }
 0x14e   : > { %v233_v39 = vstv %s368_s28 }
 0x14f   : > { %v234_v41 = vmul.f32 %v233_v39, %v232_v37 }
 0x151   : > { %v247_v43 = vmul.f32 %v245_v40, %v234_v41 }
 0x153   : > { %v260_v44 = vadd.f32 %v258_v42, %v247_v43 }
 0x155   : > { %261 = vst [vmem:[%s186_s7] sm:$0xff] %v260_v44 }
 0x156   : > { %464 = shalt.err (!%p461_p10)
}
 0x157   : > { %s465_s17 = scalar_lea.hbm %s275_s8, 128  ;;  %s469_s20 = scalar_lea.hbm %s696_s3, 256 }
 0x158   : > { %p466_p2 = scmp.ne.s32.totalorder %s275_s8, %s465_s17  ;;  %p470_p7 = scmp.lt.s32.totalorder %s275_s8, %s696_s3 }
 0x159   : > { %p471_p0 = scmp.lt.s32.totalorder %s469_s20, %s465_s17 }
 0x15a   : > { %p467_p4 = pnand %p466_p2, %p707_p12 }
 0x15b   : > { %p472_p6 = por %p471_p0, %p470_p7 }
 0x15c   : > { %p468_p9 = pneg %p467_p4 }
 0x15e   : > { %p473_p11 = pnand %p472_p6, %p468_p9 }
 0x160   : > { %476 = shalt.err (!%p473_p11)
}
 0x161   : > { %371 = dma.vmem_to_hbm [thread:$0]  (%p707_p12), %s278_s4, 128, %s275_s8, %s263_s9  }
 0x162 PF: > { %s289_s27 = sand.u32 1, %s503_s12   ;;  %p708_p13 = scmp.ne.s32.totalorder %s702_s25, 0 }
 0x163   : > { %p709_p1 = scmp.ge.s32.totalorder %s515_s15, 2  ;;  %s290_s28 = scalar_lea.sflag [#allocation4], %s289_s27 }
 0x165   : > { %p378_p3 = pnand %p709_p1, %p708_p13 }
 0x167   : > { %p379_p5 = pneg %p378_p3 }
 0x169   : > { %498 = dma.done.wait (%p379_p5), %s290_s28, 128  }
 0x16a   : > { %500 = vsyncadd (%p379_p5), %s290_s28, 4294967168  ;;  %p16_p8 = scmp.ge.s32.totalorder %s567_s18, 4   ;;  %s710_s12 = smov %s507_s13 }
 0x16b   : > { %s711_s13 = smov %s511_s14  ;;  %s712_s14 = smov %s579_s21 }
 0x16c   : > { %s713_s15 = smov %s567_s18  ;;  %18 = sbr.rel (!%p16_p8) target bundleno = 5 (0x5), region = 77 }
 0x171   :  { %295 = vsyncpa [#allocation3], 1 }
 0x172   :  { %297 = vsyncpa [#allocation3 + $0x1], 1 }
 0x173   :  { %298 = vsyncpa [#allocation4], 1 }
 0x174   :  { %300 = vsyncpa [#allocation4 + $0x1], 1 }

</bundles_post_ra>
